<compile_context>
chip_gen: v5e
topology: v5e:2x2
jax: 0.10.0
libtpu: 0.0.40
codegen_flags: <defaults>
</compile_context>

<pallas_src>
import functools

import jax
import jax.numpy as jnp
from jax.experimental import pallas as pl
from jax.experimental.pallas import tpu as pltpu


def _round_up(v, m):
    return (v + m - 1) // m * m


def _vmem_limit(est_bytes):
    # Explicit scoped-VMEM limit: above the 16/32 MiB defaults, but capped at
    # 64 MiB so the same kernel also compiles on v7x (64 MiB physical VMEM).
    return int(min(64 * 1024 * 1024, max(32 * 1024 * 1024, 2 * est_bytes)))


def _auto_time_chunk(seq_len, bt, h_pad, budget_bytes=36 * 1024 * 1024, cap=128):
    """Largest time chunk whose double-buffered blocks fit the VMEM budget."""
    g4 = 4 * h_pad
    fixed = 2 * h_pad * g4 * 2 + 4 * bt * h_pad * 4 + 8 * g4   # W_hh, h/c, bias
    per_t = 2 * bt * (g4 + h_pad) * 2                          # bf16 xp + out, 2x buffered
    tc = (budget_bytes - fixed) // max(per_t, 1)
    tc = int(max(2, min(tc, cap, seq_len)))
    if tc >= seq_len:
        return seq_len                    # single chunk -> block == full dim
    return max(2, tc - (tc % 2))          # even -> bf16 sublane-pair aligned


def _pick_proj_rows(total_rows, chunk_rows, target=512):
    """Row-block for the input projection: independent of the recurrence chunk,
    a multiple of chunk_rows that divides total_rows, close to `target` rows,
    and bf16-tileable (multiple of 16 rows, or the full array)."""
    n_q = total_rows // chunk_rows
    cands = []
    for m in range(1, n_q + 1):
        if n_q % m:
            continue
        r = m * chunk_rows
        if r % 16 == 0 or r == total_rows:
            cands.append(r)
    below = [r for r in cands if r <= target]
    if below:
        return max(below)
    return min(cands)   # never empty: total_rows is always acceptable


# ---------------------------------------------------------------------------
# Kernel 1: hoisted, time-parallel input projection  X_proj = x @ W_ih^T
# (bias is applied later, in f32, inside the recurrence kernel).
# ---------------------------------------------------------------------------
def _input_proj_kernel(x_ref, wih_ref, xp_ref):
    x = x_ref[...].astype(jnp.bfloat16)
    acc = jnp.dot(x, wih_ref[...], preferred_element_type=jnp.float32)
    xp_ref[...] = acc.astype(xp_ref.dtype)          # bf16 writeback


# ---------------------------------------------------------------------------
# Kernel 2: sequential LSTM recurrence.
# grid = (batch_tiles [parallel], time_chunks [arbitrary]).
# Per step: gates = xp_t + h_prev @ W_hh^T + bias; h/c carried in f32 in the
# resident final-state output blocks.
# ---------------------------------------------------------------------------
def _lstm_recurrence_kernel(xp_ref, whh_ref, bias_ref, out_ref, h_ref, c_ref,
                            *, tc, bt, h_pad, seq_len, unroll, needs_mask):
    ci = pl.program_id(1)

    @pl.when(ci == 0)
    def _():
        h_ref[...] = jnp.zeros_like(h_ref)
        c_ref[...] = jnp.zeros_like(c_ref)

    bias = bias_ref[...]                                   # (1, 4Hp) f32

    # TODO(synk): hold W_hh in the MXU weight registers for the whole chunk via
    # pltpu.matmul_push_rhs / matmul_acc_lhs / matmul_pop instead of re-pushing
    # the RHS in every per-step jnp.dot.
    def make_step(masked):
        def step(t, carry):
            h_prev, c_prev = carry
            row = pl.multiple_of(t * bt, bt)
            xp_t = xp_ref[pl.ds(row, bt), :]               # (bt, 4Hp) bf16
            gates = (jnp.dot(h_prev.astype(jnp.bfloat16), whh_ref[...],
                             preferred_element_type=jnp.float32)
                     + xp_t.astype(jnp.float32) + bias)
            i_g = jax.nn.sigmoid(gates[:, 0 * h_pad:1 * h_pad])
            f_g = jax.nn.sigmoid(gates[:, 1 * h_pad:2 * h_pad])
            g_g = jnp.tanh(gates[:, 2 * h_pad:3 * h_pad])
            o_g = jax.nn.sigmoid(gates[:, 3 * h_pad:4 * h_pad])
            c_new = f_g * c_prev + i_g * g_g
            h_new = o_g * jnp.tanh(c_new)
            if masked:  # only compiled into the last-chunk variant
                valid = (ci * tc + t) < seq_len
                h_new = jnp.where(valid, h_new, h_prev)
                c_new = jnp.where(valid, c_new, c_prev)
            out_ref[pl.ds(row, bt), :] = h_new.astype(out_ref.dtype)
            return (h_new, c_new)
        return step

    def run(masked):
        h_t, c_t = jax.lax.fori_loop(0, tc, make_step(masked),
                                     (h_ref[...], c_ref[...]), unroll=unroll)
        h_ref[...] = h_t
        c_ref[...] = c_t

    if needs_mask:
        last = pl.num_programs(1) - 1

        @pl.when(ci < last)
        def _():
            run(False)           # steady-state chunks: no masking work

        @pl.when(ci == last)
        def _():
            run(True)            # only the last chunk masks padded timesteps
    else:
        run(False)


# ---------------------------------------------------------------------------
# One LSTM layer over the full (padded) sequence.
# x3: (b_tiles, t_pad*bt, In_pad), rows within a tile ordered (t, b_in_tile).
# ---------------------------------------------------------------------------
def lstm_layer_pallas(x3, wih_t, whh_t, bias, *, seq_len, time_chunk, bt, h_pad):
    b_tiles, rows_per_tile, in_pad = x3.shape
    tc = time_chunk
    g4 = 4 * h_pad
    chunk_rows = tc * bt
    assert rows_per_tile % chunk_rows == 0
    n_chunks = rows_per_tile // chunk_rows
    t_pad = n_chunks * tc
    needs_mask = t_pad > seq_len
    total_rows = b_tiles * rows_per_tile

    # ---- Kernel 1: time-parallel input projection, large independent blocks ----
    x2d = x3.reshape(total_rows, in_pad)
    proj_rows = _pick_proj_rows(total_rows, chunk_rows)
    est1 = (2 * proj_rows * in_pad * x2d.dtype.itemsize
            + 2 * proj_rows * g4 * 2 + 2 * in_pad * g4 * 2)
    xp2 = pl.pallas_call(
        _input_proj_kernel,
        out_shape=jax.ShapeDtypeStruct((total_rows, g4), jnp.bfloat16),
        grid_spec=pltpu.PrefetchScalarGridSpec(
            num_scalar_prefetch=0,
            grid=(total_rows // proj_rows,),
            in_specs=[
                pl.BlockSpec((proj_rows, in_pad), lambda r: (r, 0)),   # x rows
                pl.BlockSpec((in_pad, g4), lambda r: (0, 0)),          # W_ih^T
            ],
            out_specs=pl.BlockSpec((proj_rows, g4), lambda r: (r, 0)),
        ),
        compiler_params=pltpu.CompilerParams(
            dimension_semantics=("parallel",),
            vmem_limit_bytes=_vmem_limit(est1)),
    )(x2d, wih_t)
    xp3 = xp2.reshape(b_tiles, rows_per_tile, g4)

    # ---- Kernel 2: batch-parallel x time-sequential recurrence ----
    unroll = tc if tc <= 8 else 8
    kernel = functools.partial(
        _lstm_recurrence_kernel, tc=tc, bt=bt, h_pad=h_pad,
        seq_len=seq_len, unroll=unroll, needs_mask=needs_mask)
    est2 = (2 * chunk_rows * g4 * 2 + 2 * chunk_rows * h_pad * 2
            + 2 * h_pad * g4 * 2 + 4 * bt * h_pad * 4 + 2 * g4 * 4)
    out3, h_T, c_T = pl.pallas_call(
        kernel,
        out_shape=(
            jax.ShapeDtypeStruct((b_tiles, rows_per_tile, h_pad), jnp.bfloat16),
            jax.ShapeDtypeStruct((b_tiles * bt, h_pad), jnp.float32),
            jax.ShapeDtypeStruct((b_tiles * bt, h_pad), jnp.float32),
        ),
        grid_spec=pltpu.PrefetchScalarGridSpec(
            num_scalar_prefetch=0,
            grid=(b_tiles, n_chunks),
            in_specs=[
                pl.BlockSpec((None, chunk_rows, g4), lambda bi, ci: (bi, ci, 0)),
                pl.BlockSpec((h_pad, g4), lambda bi, ci: (0, 0)),      # W_hh^T
                pl.BlockSpec((1, g4), lambda bi, ci: (0, 0)),          # bias f32
            ],
            out_specs=[
                pl.BlockSpec((None, chunk_rows, h_pad), lambda bi, ci: (bi, ci, 0)),
                pl.BlockSpec((bt, h_pad), lambda bi, ci: (bi, 0)),     # final h (resident)
                pl.BlockSpec((bt, h_pad), lambda bi, ci: (bi, 0)),     # final c (resident)
            ],
        ),
        compiler_params=pltpu.CompilerParams(
            dimension_semantics=("parallel", "arbitrary"),
            vmem_limit_bytes=_vmem_limit(est2)),
    )(xp3, whh_t, bias)
    return out3, h_T, c_T


# ---------------------------------------------------------------------------
# Module wrapper (matches PyTorch Seq2SeqEncoder forward semantics).
# ---------------------------------------------------------------------------
class Seq2SeqEncoderPallas:
    def __init__(self, vocab_size, embed_size, num_hiddens, num_layers,
                 dropout=0.0, key=jax.random.PRNGKey(0)):
        self.num_hiddens = num_hiddens
        self.num_layers = num_layers
        self.embed_size = embed_size
        # dropout only applies between layers in training; this forward is
        # inference-equivalent (dropout inactive), like PyTorch .eval().
        keys = jax.random.split(key, 1 + 4 * num_layers)
        self.embedding = 0.1 * jax.random.normal(
            keys[0], (vocab_size, embed_size), jnp.float32)

        h_pad = _round_up(num_hiddens, 128)
        self._h_pad = h_pad
        self.lstm_params = []
        self._prepped = []
        for layer in range(num_layers):
            in_sz = embed_size if layer == 0 else num_hiddens
            in_pad = _round_up(in_sz, 128)
            k = keys[1 + 4 * layer: 1 + 4 * (layer + 1)]
            w_ih = 0.1 * jax.random.normal(k[0], (4 * num_hiddens, in_sz), jnp.float32)
            w_hh = 0.1 * jax.random.normal(k[1], (4 * num_hiddens, num_hiddens), jnp.float32)
            b_ih = 0.1 * jax.random.normal(k[2], (4 * num_hiddens,), jnp.float32)
            b_hh = 0.1 * jax.random.normal(k[3], (4 * num_hiddens,), jnp.float32)
            self.lstm_params.append((w_ih, w_hh, b_ih, b_hh))

            # Per-gate padding (keeps gate slices 128-aligned); bf16 MXU weights,
            # f32 bias.  Padded rows/cols are EXACT zeros in both weights and
            # bias so padded hidden columns stay zero through the recurrence.
            g4 = 4 * h_pad
            wih_p = jnp.zeros((4, h_pad, in_pad), jnp.float32).at[:, :num_hiddens, :in_sz].set(
                w_ih.reshape(4, num_hiddens, in_sz))
            wih_t = wih_p.reshape(g4, in_pad).T.astype(jnp.bfloat16)       # (In_pad, 4Hp)
            whh_p = jnp.zeros((4, h_pad, h_pad), jnp.float32).at[:, :num_hiddens, :num_hiddens].set(
                w_hh.reshape(4, num_hiddens, num_hiddens))
            whh_t = whh_p.reshape(g4, h_pad).T.astype(jnp.bfloat16)        # (Hp, 4Hp)
            bias = jnp.zeros((4, h_pad), jnp.float32).at[:, :num_hiddens].set(
                (b_ih + b_hh).reshape(4, num_hiddens)).reshape(1, g4)      # (1, 4Hp) f32
            self._prepped.append((wih_t, whh_t, bias))

    def __call__(self, X, *, time_chunk=None):
        """X: (batch, seq) int32 token ids.

        Returns (out, (h, c)) with out: (seq, batch, H); h, c: (layers, batch, H).
        """
        emb = jnp.take(self.embedding, X, axis=0)          # (B, T, E), XLA gather
        B, T, E = emb.shape
        H = self.num_hiddens
        h_pad = self._h_pad
        e_pad = _round_up(E, 128)

        b_pad = _round_up(B, 8)
        b_tiles = 2 if b_pad % 16 == 0 else 1              # v7x: one batch tile per TC
        bt = b_pad // b_tiles

        if time_chunk is None:
            tc = _auto_time_chunk(T, bt, h_pad)
        else:
            tc = max(1, min(int(time_chunk), T))
        if tc < T and tc % 2:                              # keep bf16 blocks tileable
            tc += 1
        t_pad = _round_up(T, tc)

        # Pad and lay out as (b_tiles, t_pad, bt, E) -> (b_tiles, t_pad*bt, E):
        # time-major within each batch tile (rows of a chunk are contiguous).
        x = jnp.zeros((b_pad, t_pad, e_pad), jnp.bfloat16).at[:B, :T, :E].set(
            emb.astype(jnp.bfloat16))
        x = x.reshape(b_tiles, bt, t_pad, e_pad).transpose(0, 2, 1, 3)
        x = x.reshape(b_tiles, t_pad * bt, e_pad)

        hs, cs = [], []
        for (wih_t, whh_t, bias) in self._prepped:
            x, h_T, c_T = lstm_layer_pallas(
                x, wih_t, whh_t, bias,
                seq_len=T, time_chunk=tc, bt=bt, h_pad=h_pad)
            hs.append(h_T[:B, :H])
            cs.append(c_T[:B, :H])

        out = x.reshape(b_tiles, t_pad, bt, h_pad).transpose(1, 0, 2, 3)
        out = out.reshape(t_pad, b_pad, h_pad)[:T, :B, :H].astype(jnp.float32)
        state = (jnp.stack(hs, axis=0), jnp.stack(cs, axis=0))
        return out, state


# ---------------------------------------------------------------------------
# Pure-JAX (f32) reference for correctness checking.
# ---------------------------------------------------------------------------
def _lstm_reference(x, params):
    def layer(xs, w_ih, w_hh, b_ih, b_hh):
        hid = w_hh.shape[1]
        batch = xs.shape[1]

        def step(carry, x_t):
            h, c = carry
            gates = x_t @ w_ih.T + h @ w_hh.T + b_ih + b_hh
            i, f, g, o = jnp.split(gates, 4, axis=-1)
            c = jax.nn.sigmoid(f) * c + jax.nn.sigmoid(i) * jnp.tanh(g)
            h = jax.nn.sigmoid(o) * jnp.tanh(c)
            return (h, c), h

        h0 = jnp.zeros((batch, hid), jnp.float32)
        (h_T, c_T), out = jax.lax.scan(step, (h0, h0), xs)
        return out, h_T, c_T

    outs = x
    hs, cs = [], []
    for p in params:
        outs, h_T, c_T = layer(outs, *p)
        hs.append(h_T)
        cs.append(c_T)
    return outs, jnp.stack(hs, axis=0), jnp.stack(cs, axis=0)


if __name__ == "__main__":
    vocab_size, embed_size, num_hiddens, num_layers = 16, 8, 16, 2
    key = jax.random.PRNGKey(0)
    k_tok1, k_tok2, k_params = jax.random.split(key, 3)

    encoder = Seq2SeqEncoderPallas(vocab_size, embed_size, num_hiddens,
                                   num_layers, dropout=0.0, key=k_params)

    def check(X, **kw):
        out, (h, c) = encoder(X, **kw)
        jax.block_until_ready((out, h, c))
        B, T = X.shape
        assert out.shape == (T, B, num_hiddens)
        assert h.shape == (num_layers, B, num_hiddens)
        assert c.shape == (num_layers, B, num_hiddens)
        emb = jnp.transpose(jnp.take(encoder.embedding, X, axis=0), (1, 0, 2))
        ref_out, ref_h, ref_c = _lstm_reference(emb, encoder.lstm_params)
        assert jnp.allclose(out, ref_out, atol=2e-2, rtol=2e-2)
        assert jnp.allclose(h, ref_h, atol=2e-2, rtol=2e-2)
        assert jnp.allclose(c, ref_c, atol=2e-2, rtol=2e-2)

    # 1) small batch, auto time-chunk: single-chunk path, one batch tile.
    X1 = jax.random.randint(k_tok1, (2, 7), 0, vocab_size, dtype=jnp.int32)
    check(X1)

    # 2) larger batch + forced small time chunk: exercises the multi-chunk
    #    masked last-chunk path AND the batch-parallel grid axis (b_tiles=2).
    X2 = jax.random.randint(k_tok2, (16, 7), 0, vocab_size, dtype=jnp.int32)
    check(X2, time_chunk=4)

    print("KERNEL_OK")
</pallas_src>

<mosaic_0001>
module attributes {stable_mosaic.version = 11 : i64} {
  func.func @_input_proj_kernel(%arg0: i32, %arg1: memref<56x128xbf16, #tpu.memory_space<vmem>>, %arg2: memref<128x512xbf16, #tpu.memory_space<vmem>>, %arg3: memref<56x512xbf16, #tpu.memory_space<vmem>>) attributes {dimension_semantics = [#tpu.dimension_semantics<parallel>], iteration_bounds = array<i64: 1>, scalar_prefetch = 0 : i64, scratch_operands = 0 : i64, tpu.core_type = #tpu.core_type<tc>, window_params = [{transform_indices = @transform_0, window_bounds = array<i64: 56, 128>}, {pipeline_mode = #tpu.pipeline_mode<synchronous>, transform_indices = @transform_1, window_bounds = array<i64: 128, 512>}, {transform_indices = @transform_2, window_bounds = array<i64: 56, 512>}]} {
    %c0 = arith.constant 0 : index
    %c0_0 = arith.constant 0 : index
    %0 = vector.load %arg1[%c0, %c0_0] : memref<56x128xbf16, #tpu.memory_space<vmem>>, vector<56x128xbf16>
    %c0_1 = arith.constant 0 : index
    %c0_2 = arith.constant 0 : index
    %1 = vector.load %arg2[%c0_1, %c0_2] : memref<128x512xbf16, #tpu.memory_space<vmem>>, vector<128x512xbf16>
    %cst = arith.constant dense<0.000000e+00> : vector<56x512xf32>
    %2 = tpu.matmul %0, %1, %cst {dimension_numbers = #tpu.dot_dimension_numbers<[1], [0], [0], [1], [0, 0, 1, 1], [], []>} : vector<56x128xbf16>, vector<128x512xbf16>, vector<56x512xf32> -> vector<56x512xf32>
    %3 = arith.truncf %2 : vector<56x512xf32> to vector<56x512xbf16>
    %c0_3 = arith.constant 0 : index
    %c0_4 = arith.constant 0 : index
    %4 = vector.load %arg3[%c0_3, %c0_4] : memref<56x512xbf16, #tpu.memory_space<vmem>>, vector<56x512xbf16>
    tpu.vector_store %arg3[%c0_3, %c0_4], %3 {strides = array<i32>} : memref<56x512xbf16, #tpu.memory_space<vmem>>, vector<56x512xbf16>,
    return
  }
  func.func @transform_0(%arg0: i32) -> (i32, i32) {
    %c0_i32 = arith.constant 0 : i32
    %c0_i32_0 = arith.constant 0 : i32
    return %arg0, %c0_i32 : i32, i32
  }
  func.func @transform_1(%arg0: i32) -> (i32, i32) {
    %c0_i32 = arith.constant 0 : i32
    %c0_i32_0 = arith.constant 0 : i32
    %c0_i32_1 = arith.constant 0 : i32
    return %c0_i32, %c0_i32_0 : i32, i32
  }
  func.func @transform_2(%arg0: i32) -> (i32, i32) {
    %c0_i32 = arith.constant 0 : i32
    %c0_i32_0 = arith.constant 0 : i32
    return %arg0, %c0_i32 : i32, i32
  }
}

</mosaic_0001>

<bundles_post_ra>
// kernel: tpu_custom_call.1
= control target key start
LH: loop header
LB: loop body
LE: loop exit
PB: predicated region body
PF: predicated region fallthrough
CT: control target
= control target key end

     0   :  { %7 = vsyncpa [#allocation3], 0  ;;  %s722_s0 = inlined_call_operand.hbm [shape: bf16[56,128], index: 0, kind: input, shape index: {}]   ;;  %s723_s1 = inlined_call_operand.hbm [shape: bf16[128,512], index: 1, kind: input, shape index: {}]   ;;  %s724_s2 = inlined_call_operand.hbm [shape: bf16[56,512], index: 2, kind: output, shape index: {}]  }
   0x1   :  { %8 = vsyncpa [#allocation6], 0 }
   0x2   :  { %9 = vsyncpa [#allocation4], 0  ;;  %s14_s11 = sshll.u32 %s722_s0, 4  ;;  %s685_s12 = smov [#allocation2]   ;;  %s15_s11 = int_to_ptr.hbm [resolvable:$true] %s14_s11 }
   0x3   :  { %s16_s13 = sshll.u32 %s685_s12, 4  ;;  %s27_s16 = sshll.u32 %s723_s1, 4  ;;  %s17_s13 = int_to_ptr.vmem [resolvable:$true] %s16_s13  ;;  %s28_s16 = int_to_ptr.hbm [resolvable:$true] %s27_s16 }
   0x4   :  { %s686_s17 = smov 64   ;;  %s687_s18 = smov 4  }
   0x5   :  { %22 = dma.hbm_to_vmem [thread:$0]  %s15_s11, 448, %s17_s13, [#allocation3], %s686_s17, %s686_s17, %s687_s18  }
   0x6   :  { %s688_s19 = smov [#allocation5]   ;;  %s689_s21 = smov 256  }
   0x7   :  { %s29_s20 = sshll.u32 %s688_s19, 4  ;;  %s690_s22 = smov 16   ;;  %s30_s20 = int_to_ptr.vmem [resolvable:$true] %s29_s20 }
   0x8   :  { %35 = dma.hbm_to_vmem [thread:$0]  %s28_s16, 4096, %s30_s20, [#allocation6], %s689_s21, %s689_s21, %s690_s22  }
   0x9   :  { %679 = dma.done.wait [#allocation3], 448  }
   0xa   :  { %680 = vsyncadd [#allocation3], 4294966848 }
   0xb   :  { %681 = dma.done.wait [#allocation6], 4096  }
   0xc   :  { %682 = vsyncadd [#allocation6], 4294963200  ;;  %v551_v0 = vld [vmem:[#allocation5 + $0xe0] sm:$0xf]  ;;  %v598_v1 = vld [vmem:[#allocation5 + $0xec] sm:$0xf0] }
   0xd   :  { %v596_v2 = vld [vmem:[#allocation5 + $0xe4] sm:$0xf]  ;;  %v552_v3 = vor.u32 %v598_v1, %v551_v0  ;;  %v553_v4 = vld [vmem:[#allocation5 + $0xf0] sm:$0xf0]  ;;  %v559_v5 = vld [vmem:[#allocation5 + $0xe8] sm:$0xf] }
   0xe   :  { %v599_v6 = vld [vmem:[#allocation5 + $0xf4] sm:$0xf0]  ;;  %v556_v7 = vor.u32 %v596_v2, %v553_v4  ;;  %v597_v9 = vld [vmem:[#allocation5 + $0xec] sm:$0xf]  ;;  %v561_v10 = vld [vmem:[#allocation5 + $0xf8] sm:$0xf0] }
   0xf   :  { %v560_v8 = vor.u32 %v599_v6, %v559_v5  ;;  %v535_v11 = vld [vmem:[#allocation5 + $0xc0] sm:$0xf]  ;;  %265 = vmatpush.bf16.msra.mxu0 %v552_v3  ;;  %v564_v12 = vor.u32 %v597_v9, %v561_v10  ;;  %v594_v13 = vld [vmem:[#allocation5 + $0xcc] sm:$0xf0]  ;;  %v592_v14 = vld [vmem:[#allocation5 + $0xc4] sm:$0xf] }
  0x10   :  { %v537_v15 = vld [vmem:[#allocation5 + $0xd0] sm:$0xf0]  ;;  %293 = vmatpush.bf16.msra.mxu1 %v556_v7  ;;  %v536_v16 = vor.u32 %v594_v13, %v535_v11  ;;  %v543_v18 = vld [vmem:[#allocation5 + $0xc8] sm:$0xf]  ;;  %v595_v19 = vld [vmem:[#allocation5 + $0xd4] sm:$0xf0] }
  0x11   :  { %321 = vmatpush.bf16.msra.mxu2 %v560_v8  ;;  %v540_v17 = vor.u32 %v592_v14, %v537_v15  ;;  %v593_v20 = vld [vmem:[#allocation5 + $0xcc] sm:$0xf]  ;;  %349 = vmatpush.bf16.msra.mxu3 %v564_v12  ;;  %v544_v21 = vor.u32 %v595_v19, %v543_v18  ;;  %v545_v22 = vld [vmem:[#allocation5 + $0xd8] sm:$0xf0]  ;;  %v519_v23 = vld [vmem:[#allocation5 + $0xa0] sm:$0xf] }
  0x12   :  { %v590_v24 = vld [vmem:[#allocation5 + $0xac] sm:$0xf0]  ;;  %v548_v25 = vor.u32 %v593_v20, %v545_v22  ;;  %v588_v26 = vld [vmem:[#allocation5 + $0xa4] sm:$0xf]  ;;  %v521_v27 = vld [vmem:[#allocation5 + $0xb0] sm:$0xf0] }
  0x13   :  { %v527_v28 = vld [vmem:[#allocation5 + $0xa8] sm:$0xf]  ;;  %266 = vmatpush.bf16.msra.mxu0 %v536_v16  ;;  %v520_v29 = vor.u32 %v590_v24, %v519_v23  ;;  %v591_v30 = vld [vmem:[#allocation5 + $0xb4] sm:$0xf0]  ;;  %v589_v31 = vld [vmem:[#allocation5 + $0xac] sm:$0xf]  ;;  %v524_v33 = vor.u32 %v588_v26, %v521_v27 }
  0x14   :  { %v529_v32 = vld [vmem:[#allocation5 + $0xb8] sm:$0xf0]  ;;  %294 = vmatpush.bf16.msra.mxu1 %v540_v17  ;;  %v528_v34 = vor.u32 %v591_v30, %v527_v28  ;;  %v503_v35 = vld [vmem:[#allocation5 + $0x80] sm:$0xf]  ;;  %v586_v36 = vld [vmem:[#allocation5 + $0x8c] sm:$0xf0] }
  0x15   :  { %322 = vmatpush.bf16.msra.mxu2 %v544_v21  ;;  %v584_v37 = vld [vmem:[#allocation5 + $0x84] sm:$0xf]  ;;  %350 = vmatpush.bf16.msra.mxu3 %v548_v25  ;;  %v532_v38 = vor.u32 %v589_v31, %v529_v32  ;;  %v505_v39 = vld [vmem:[#allocation5 + $0x90] sm:$0xf0]  ;;  %v511_v40 = vld [vmem:[#allocation5 + $0x88] sm:$0xf]  ;;  %v504_v44 = vor.u32 %v586_v36, %v503_v35 }
  0x16   :  { %v587_v41 = vld [vmem:[#allocation5 + $0x94] sm:$0xf0]  ;;  %v585_v42 = vld [vmem:[#allocation5 + $0x8c] sm:$0xf]  ;;  %v513_v43 = vld [vmem:[#allocation5 + $0x98] sm:$0xf0]  ;;  %v508_v45 = vor.u32 %v584_v37, %v505_v39 }
  0x17   :  { %267 = vmatpush.bf16.msra.mxu0 %v520_v29  ;;  %v512_v46 = vor.u32 %v587_v41, %v511_v40  ;;  %v487_v47 = vld [vmem:[#allocation5 + $0x60] sm:$0xf]  ;;  %v582_v48 = vld [vmem:[#allocation5 + $0x6c] sm:$0xf0]  ;;  %v580_v49 = vld [vmem:[#allocation5 + $0x64] sm:$0xf]  ;;  %v516_v50 = vor.u32 %v585_v42, %v513_v43 }
  0x18   :  { %295 = vmatpush.bf16.msra.mxu1 %v524_v33  ;;  %v489_v51 = vld [vmem:[#allocation5 + $0x70] sm:$0xf0]  ;;  %v495_v52 = vld [vmem:[#allocation5 + $0x68] sm:$0xf]  ;;  %v583_v53 = vld [vmem:[#allocation5 + $0x74] sm:$0xf0]  ;;  %v488_v56 = vor.u32 %v582_v48, %v487_v47 }
  0x19   :  { %323 = vmatpush.bf16.msra.mxu2 %v528_v34  ;;  %351 = vmatpush.bf16.msra.mxu3 %v532_v38  ;;  %v581_v54 = vld [vmem:[#allocation5 + $0x6c] sm:$0xf]  ;;  %v497_v55 = vld [vmem:[#allocation5 + $0x78] sm:$0xf0]  ;;  %v492_v57 = vor.u32 %v580_v49, %v489_v51  ;;  %v496_v58 = vor.u32 %v583_v53, %v495_v52  ;;  %v471_v59 = vld [vmem:[#allocation5 + $0x40] sm:$0xf] }
  0x1a   :  { %v578_v60 = vld [vmem:[#allocation5 + $0x4c] sm:$0xf0]  ;;  %v576_v61 = vld [vmem:[#allocation5 + $0x44] sm:$0xf]  ;;  %v500_v62 = vor.u32 %v581_v54, %v497_v55  ;;  %v473_v63 = vld [vmem:[#allocation5 + $0x50] sm:$0xf0] }
  0x1b   :  { %268 = vmatpush.bf16.msra.mxu0 %v504_v44  ;;  %v479_v0 = vld [vmem:[#allocation5 + $0x48] sm:$0xf]  ;;  %v579_v1 = vld [vmem:[#allocation5 + $0x54] sm:$0xf0]  ;;  %v577_v2 = vld [vmem:[#allocation5 + $0x4c] sm:$0xf]  ;;  %v472_v4 = vor.u32 %v578_v60, %v471_v59  ;;  %v476_v5 = vor.u32 %v576_v61, %v473_v63 }
  0x1c   :  { %296 = vmatpush.bf16.msra.mxu1 %v508_v45  ;;  %v481_v3 = vld [vmem:[#allocation5 + $0x58] sm:$0xf0]  ;;  %v480_v6 = vor.u32 %v579_v1, %v479_v0  ;;  %v455_v7 = vld [vmem:[#allocation5 + $0x20] sm:$0xf]  ;;  %v574_v8 = vld [vmem:[#allocation5 + $0x2c] sm:$0xf0] }
  0x1d   :  { %324 = vmatpush.bf16.msra.mxu2 %v512_v46  ;;  %352 = vmatpush.bf16.msra.mxu3 %v516_v50  ;;  %v572_v9 = vld [vmem:[#allocation5 + $0x24] sm:$0xf]  ;;  %v484_v10 = vor.u32 %v577_v2, %v481_v3  ;;  %v457_v11 = vld [vmem:[#allocation5 + $0x30] sm:$0xf0]  ;;  %v463_v12 = vld [vmem:[#allocation5 + $0x28] sm:$0xf]  ;;  %v456_v16 = vor.u32 %v574_v8, %v455_v7 }
  0x1e   :  { %v575_v13 = vld [vmem:[#allocation5 + $0x34] sm:$0xf0]  ;;  %v573_v14 = vld [vmem:[#allocation5 + $0x2c] sm:$0xf]  ;;  %v465_v15 = vld [vmem:[#allocation5 + $0x38] sm:$0xf0]  ;;  %v460_v17 = vor.u32 %v572_v9, %v457_v11 }
  0x1f   :  { %269 = vmatpush.bf16.msra.mxu0 %v488_v56  ;;  %v464_v18 = vor.u32 %v575_v13, %v463_v12  ;;  %v439_v19 = vld [vmem:[#allocation5] sm:$0xf]  ;;  %v570_v20 = vld [vmem:[#allocation5 + $0xc] sm:$0xf0]  ;;  %v568_v21 = vld [vmem:[#allocation5 + $0x4] sm:$0xf]  ;;  %v468_v22 = vor.u32 %v573_v14, %v465_v15 }
  0x20   :  { %297 = vmatpush.bf16.msra.mxu1 %v492_v57  ;;  %v441_v23 = vld [vmem:[#allocation5 + $0x10] sm:$0xf0]  ;;  %v447_v24 = vld [vmem:[#allocation5 + $0x8] sm:$0xf]  ;;  %v571_v25 = vld [vmem:[#allocation5 + $0x14] sm:$0xf0]  ;;  %v440_v28 = vor.u32 %v570_v20, %v439_v19 }
  0x21   :  { %325 = vmatpush.bf16.msra.mxu2 %v496_v58  ;;  %353 = vmatpush.bf16.msra.mxu3 %v500_v62  ;;  %v569_v26 = vld [vmem:[#allocation5 + $0xc] sm:$0xf]  ;;  %v449_v27 = vld [vmem:[#allocation5 + $0x18] sm:$0xf0]  ;;  %v444_v29 = vor.u32 %v568_v21, %v441_v23  ;;  %v448_v30 = vor.u32 %v571_v25, %v447_v24  ;;  %v565_v32 = vld [vmem:[#allocation2] sm:$0xff]  ;;  %s691_s0 = smov [#allocation7]  }
  0x22   :  { %v452_v31 = vor.u32 %v569_v26, %v449_v27  ;;  %v566_v33 = vld [vmem:[#allocation2 + $0x8] sm:$0xff]  ;;  %v567_v34 = vld [vmem:[#allocation2 + $0x10] sm:$0xff]  ;;  %v50_v35 = vld [vmem:[#allocation2 + $0x18] sm:$0xf]  ;;  %s409_s1 = sshll.u32 %s691_s0, 4  ;;  %s411_s25 = sshll.u32 %s724_s2, 4  ;;  %s410_s1 = int_to_ptr.vmem [resolvable:$true] %s409_s1  ;;  %s412_s25 = int_to_ptr.hbm [resolvable:$true] %s411_s25 }
  0x23   :  { %270 = vmatpush.bf16.msra.mxu0 %v472_v4  ;;  %v96_v36 = vunpack.c.l.b16 %v50_v35 }
  0x24   :  { %298 = vmatpush.bf16.msra.mxu1 %v476_v5 }
  0x25   :  { %326 = vmatpush.bf16.msra.mxu2 %v480_v6  ;;  %354 = vmatpush.bf16.msra.mxu3 %v484_v10  ;;  %v100_v37 = vpack.c.b16 %v96_v36, %v96_v36 }
  0x27   :  { %271 = vmatpush.bf16.msra.mxu0 %v456_v16 }
  0x28   :  { %299 = vmatpush.bf16.msra.mxu1 %v460_v17 }
  0x29   :  { %327 = vmatpush.bf16.msra.mxu2 %v464_v18  ;;  %355 = vmatpush.bf16.msra.mxu3 %v468_v22 }
  0x2b   :  { %272 = vmatpush.bf16.msra.mxu0 %v440_v28 }
  0x2c   :  { %300 = vmatpush.bf16.msra.mxu1 %v444_v29 }
  0x2d   :  { %328 = vmatpush.bf16.msra.mxu2 %v448_v30  ;;  %356 = vmatpush.bf16.msra.mxu3 %v452_v31 }
  0x2e   :  { %273 = vmatmul.bf16.vlgmr.msra.gmra.mxu0 %v565_v32 }
  0x2f   :  { %301 = vmatmul.bf16.vlgmr.msra.gmra.mxu1 %v565_v32 }
  0x30   :  { %329 = vmatmul.bf16.vlgmr.msra.gmra.mxu2 %v565_v32  ;;  %357 = vmatmul.bf16.vlgmr.msra.gmra.mxu3 %v565_v32 }
  0x3e   :  { %278 = vmatmul.bf16.gmra.mxu0 %v566_v33 }
  0x3f   :  { %306 = vmatmul.bf16.gmra.mxu1 %v566_v33 }
  0x40   :  { %334 = vmatmul.bf16.gmra.mxu2 %v566_v33  ;;  %362 = vmatmul.bf16.gmra.mxu3 %v566_v33 }
  0x4e   :  { %283 = vmatmul.bf16.gmra.mxu0 %v567_v34 }
  0x4f   :  { %311 = vmatmul.bf16.gmra.mxu1 %v567_v34 }
  0x50   :  { %339 = vmatmul.bf16.gmra.mxu2 %v567_v34  ;;  %367 = vmatmul.bf16.gmra.mxu3 %v567_v34 }
  0x5e   :  { %288 = vmatmul.bf16.gmra.mxu0 %v100_v37 }
  0x5f   :  { %316 = vmatmul.bf16.gmra.mxu1 %v100_v37 }
  0x60   :  { %344 = vmatmul.bf16.gmra.mxu2 %v100_v37  ;;  %372 = vmatmul.bf16.gmra.mxu3 %v100_v37 }
  0xab   :  { %v274_v38 = vpop.f32.mrf.mxu0 }
  0xac   :  { %v302_v39 = vpop.f32.mrf.mxu1 }
  0xad   :  { %v377_v40 = vpack.c.bf16 %v302_v39, %v274_v38 }
  0xaf   :  { %391 = vst [vmem:[#allocation7] sm:$0xff] %v377_v40 }
  0xb3   :  { %v330_v41 = vpop.f32.mrf.mxu2  ;;  %v358_v42 = vpop.f32.mrf.mxu3 }
  0xb4   :  { %v276_v43 = vpop.f32.mrf.mxu0  ;;  %v378_v44 = vpack.c.bf16 %v358_v42, %v330_v41  ;;  %v304_v45 = vpop.f32.mrf.mxu1 }
  0xb5   :  { %v379_v46 = vpack.c.bf16 %v304_v45, %v276_v43 }
  0xb6   :  { %392 = vst [vmem:[#allocation7 + $0x8] sm:$0xff] %v378_v44 }
  0xb7   :  { %393 = vst [vmem:[#allocation7 + $0x10] sm:$0xff] %v379_v46 }
  0xbb   :  { %v332_v47 = vpop.f32.mrf.mxu2  ;;  %v360_v48 = vpop.f32.mrf.mxu3 }
  0xbc   :  { %v279_v49 = vpop.f32.mrf.mxu0  ;;  %v380_v50 = vpack.c.bf16 %v360_v48, %v332_v47  ;;  %v307_v51 = vpop.f32.mrf.mxu1 }
  0xbd   :  { %v381_v52 = vpack.c.bf16 %v307_v51, %v279_v49 }
  0xbe   :  { %394 = vst [vmem:[#allocation7 + $0x18] sm:$0xff] %v380_v50 }
  0xbf   :  { %395 = vst [vmem:[#allocation7 + $0x20] sm:$0xff] %v381_v52 }
  0xc3   :  { %v335_v53 = vpop.f32.mrf.mxu2  ;;  %v363_v54 = vpop.f32.mrf.mxu3 }
  0xc4   :  { %v281_v55 = vpop.f32.mrf.mxu0  ;;  %v382_v56 = vpack.c.bf16 %v363_v54, %v335_v53  ;;  %v309_v57 = vpop.f32.mrf.mxu1 }
  0xc5   :  { %v383_v58 = vpack.c.bf16 %v309_v57, %v281_v55 }
  0xc6   :  { %396 = vst [vmem:[#allocation7 + $0x28] sm:$0xff] %v382_v56 }
  0xc7   :  { %397 = vst [vmem:[#allocation7 + $0x30] sm:$0xff] %v383_v58 }
  0xcb   :  { %v337_v59 = vpop.f32.mrf.mxu2  ;;  %v365_v60 = vpop.f32.mrf.mxu3 }
  0xcc   :  { %v284_v61 = vpop.f32.mrf.mxu0  ;;  %v384_v62 = vpack.c.bf16 %v365_v60, %v337_v59  ;;  %v312_v63 = vpop.f32.mrf.mxu1 }
  0xcd   :  { %v385_v0 = vpack.c.bf16 %v312_v63, %v284_v61 }
  0xce   :  { %398 = vst [vmem:[#allocation7 + $0x38] sm:$0xff] %v384_v62 }
  0xcf   :  { %399 = vst [vmem:[#allocation7 + $0x40] sm:$0xff] %v385_v0 }
  0xd3   :  { %v340_v1 = vpop.f32.mrf.mxu2  ;;  %v368_v2 = vpop.f32.mrf.mxu3 }
  0xd4   :  { %v286_v3 = vpop.f32.mrf.mxu0  ;;  %v386_v4 = vpack.c.bf16 %v368_v2, %v340_v1  ;;  %v314_v5 = vpop.f32.mrf.mxu1 }
  0xd5   :  { %v387_v6 = vpack.c.bf16 %v314_v5, %v286_v3 }
  0xd6   :  { %400 = vst [vmem:[#allocation7 + $0x48] sm:$0xff] %v386_v4 }
  0xd7   :  { %401 = vst [vmem:[#allocation7 + $0x50] sm:$0xff] %v387_v6 }
  0xdb   :  { %v342_v7 = vpop.f32.mrf.mxu2  ;;  %v370_v8 = vpop.f32.mrf.mxu3 }
  0xdc   :  { %v289_v9 = vpop.f32.mrf.mxu0  ;;  %v388_v10 = vpack.c.bf16 %v370_v8, %v342_v7  ;;  %v317_v11 = vpop.f32.mrf.mxu1 }
  0xdd   :  { %v389_v12 = vpack.c.bf16 %v317_v11, %v289_v9 }
  0xde   :  { %402 = vst [vmem:[#allocation7 + $0x58] sm:$0xff] %v388_v10 }
  0xdf   :  { %403 = vst [vmem:[#allocation7 + $0x60] sm:$0xff] %v389_v12 }
  0xe3   :  { %v345_v13 = vpop.f32.mrf.mxu2  ;;  %v373_v14 = vpop.f32.mrf.mxu3 }
  0xe4   :  { %v291_v15 = vpop.f32.mrf.mxu0  ;;  %v390_v16 = vpack.c.bf16 %v373_v14, %v345_v13  ;;  %v319_v17 = vpop.f32.mrf.mxu1 }
  0xe6   :  { %404 = vst [vmem:[#allocation7 + $0x68] sm:$0xff] %v390_v16 }
  0xe7   :  { %417 = dma.vmem_to_hbm [thread:$0]  %s410_s1, 1792, %s412_s25, [#allocation4], %s689_s21, %s689_s21, %s690_s22  }
  0xeb   :  { %v347_v18 = vpop.f32.mrf.mxu2  ;;  %v375_v19 = vpop.f32.mrf.mxu3 }
  0xec   :  { %683 = dma.done.wait [#allocation4], 1792  }
  0xed   :  { %684 = vsyncadd [#allocation4], 4294965504 }
  0xee   :  { %422 = vsyncpa [#allocation3], 1 }
  0xef   :  { %423 = vsyncpa [#allocation6], 1 }
  0xf0   :  { %424 = vsyncpa [#allocation4], 1 }

</bundles_post_ra>
